<compile_context>
chip_gen: v7x
topology: tpu7x:2x2x1
jax: 0.10.0
libtpu: 0.0.40
codegen_flags: <defaults>
</compile_context>

<pallas_src>
import jax
import jax.numpy as jnp
from jax.experimental import pallas as pl
from jax.experimental.pallas import tpu as pltpu

_LANE = 128
_SUBLANE = 8
# ~2 MiB per X/out block: double-buffered X + double-buffered out + P row
# totals < 10 MiB, inside every chip's scoped-VMEM default.
_TARGET_BLOCK_BYTES = 2 * 1024 * 1024


def _build_positional_table(max_len: int, num_hiddens: int) -> jnp.ndarray:
    """Replicates the PyTorch __init__ construction of self.P exactly (f32)."""
    pos = jnp.arange(max_len, dtype=jnp.float32).reshape(-1, 1)          # (max_len, 1)
    div = jnp.power(
        10000.0,
        jnp.arange(0, num_hiddens, 2, dtype=jnp.float32) / num_hiddens,  # (ceil(H/2),)
    )
    angles = pos / div                                                   # (max_len, ceil(H/2))
    P = jnp.zeros((1, max_len, num_hiddens), dtype=jnp.float32)
    P = P.at[:, :, 0::2].set(jnp.sin(angles)[None, :, :])
    # PyTorch's `self.P[:, :, 1::2] = torch.cos(X)` assumes even num_hiddens.
    P = P.at[:, :, 1::2].set(jnp.cos(angles)[None, :, :])
    return P


def _choose_tiles(B: int, N: int, itemsize: int):
    """Pick a (bb, cc) block shape for the flattened (B, N) activation view."""
    # Column tile: lane-dense (multiple of 128) that divides N when possible.
    col_cap = max(
        _LANE, (_TARGET_BLOCK_BYTES // (itemsize * _SUBLANE)) // _LANE * _LANE
    )
    if N % _LANE == 0:
        cc = min(N, col_cap)
        while N % cc != 0:   # terminates at cc == 128 since N % 128 == 0
            cc -= _LANE
    else:
        cc = N  # full extent: legal block shape even if not a multiple of 128
    # Batch tile: block dim must be a multiple of 8 or the full batch extent.
    row_cap = max(1, _TARGET_BLOCK_BYTES // (cc * itemsize))
    if B <= row_cap:
        bb = B
    else:
        bb = max(_SUBLANE, (row_cap // _SUBLANE) * _SUBLANE)
    return bb, cc


def _pos_enc_kernel(x_ref, p_ref, o_ref):
    # x_ref / o_ref: (bb, cc) tile; p_ref: (1, cc), sublane-broadcast over rows.
    o_ref[...] = x_ref[...] + p_ref[...]


def positional_encoding_forward(x: jnp.ndarray, P: jnp.ndarray) -> jnp.ndarray:
    """x: (B, T, H) any float dtype.  P: (1, max_len, H) f32.  Returns (B, T, H), dtype of x."""
    B, T, H = x.shape
    N = T * H
    # Keep the add in the activation dtype (no HBM-doubling wrapper upcast);
    # casting the tiny P slice is free relative to streaming X.
    p_row = P[:, :T, :].astype(x.dtype).reshape(1, N)
    x2d = x.reshape(B, N)   # row-major reshape: free, lane-dense view

    bb, cc = _choose_tiles(B, N, x.dtype.itemsize)
    # Column tiles outer, batch tiles inner -> P's block index is constant
    # across consecutive steps, so P stays resident in VMEM over the batch.
    grid = (pl.cdiv(N, cc), pl.cdiv(B, bb))

    out2d = pl.pallas_call(
        _pos_enc_kernel,
        out_shape=jax.ShapeDtypeStruct((B, N), x.dtype),
        grid_spec=pltpu.PrefetchScalarGridSpec(
            num_scalar_prefetch=0,
            grid=grid,
            in_specs=[
                pl.BlockSpec((bb, cc), lambda j, i: (i, j)),  # X tile
                pl.BlockSpec((1, cc), lambda j, i: (0, j)),   # P row (batch-independent)
            ],
            out_specs=pl.BlockSpec((bb, cc), lambda j, i: (i, j)),
        ),
        compiler_params=pltpu.CompilerParams(
            dimension_semantics=("parallel", "parallel"),
        ),
    )(x2d, p_row)
    return out2d.reshape(B, T, H)


class PositionalEncodingPallas:
    """Thin wrapper mirroring the nn.Module interface (eval mode)."""

    def __init__(self, num_hiddens: int, dropout: float, max_len: int = 1000):
        self.num_hiddens = num_hiddens
        self.dropout = dropout  # eval mode -> identity
        self.P = _build_positional_table(max_len, num_hiddens)

    def __call__(self, X: jnp.ndarray) -> jnp.ndarray:
        return positional_encoding_forward(X, self.P)


if __name__ == "__main__":
    # Small shapes implied by the forward: (batch, num_steps, num_hiddens)
    batch, num_steps, num_hiddens = 2, 8, 32
    dropout_rate = 0.1  # identity in eval mode
    max_len = 64

    key = jax.random.PRNGKey(0)
    X = jax.random.normal(key, (batch, num_steps, num_hiddens), dtype=jnp.float32)

    module = PositionalEncodingPallas(num_hiddens, dropout_rate, max_len=max_len)
    out = jax.block_until_ready(module(X))

    # Pure-JAX reference check of the hot path (f32).
    ref = X + module.P[:, :num_steps, :]
    assert out.shape == (batch, num_steps, num_hiddens)
    assert out.dtype == X.dtype
    assert jnp.allclose(out, ref, atol=1e-6), "f32 mismatch vs. reference"

    # Also exercise the bf16 path (no wrapper upcast; output stays bf16) with
    # a shape large enough to produce a multi-step grid.
    Xb = jax.random.normal(jax.random.PRNGKey(1), (16, 64, 256), dtype=jnp.bfloat16)
    mod_b = PositionalEncodingPallas(256, dropout_rate, max_len=128)
    out_b = jax.block_until_ready(mod_b(Xb))
    ref_b = Xb + mod_b.P[:, :64, :].astype(jnp.bfloat16)
    assert out_b.dtype == jnp.bfloat16
    assert jnp.allclose(
        out_b.astype(jnp.float32), ref_b.astype(jnp.float32), atol=1e-2
    ), "bf16 mismatch vs. reference"

    print("KERNEL_OK")
</pallas_src>

<mosaic_0001>
module attributes {stable_mosaic.version = 11 : i64} {
  func.func @_pos_enc_kernel(%arg0: i32, %arg1: i32, %arg2: memref<2x256xf32, #tpu.memory_space<vmem>>, %arg3: memref<1x256xf32, #tpu.memory_space<vmem>>, %arg4: memref<2x256xf32, #tpu.memory_space<vmem>>) attributes {dimension_semantics = [#tpu.dimension_semantics<parallel>, #tpu.dimension_semantics<parallel>], iteration_bounds = array<i64: 1, 1>, scalar_prefetch = 0 : i64, scratch_operands = 0 : i64, tpu.core_type = #tpu.core_type<tc>, window_params = [{transform_indices = @transform_0, window_bounds = array<i64: 2, 256>}, {transform_indices = @transform_1, window_bounds = array<i64: 1, 256>}, {transform_indices = @transform_2, window_bounds = array<i64: 2, 256>}]} {
    %c0 = arith.constant 0 : index
    %c0_0 = arith.constant 0 : index
    %0 = vector.load %arg2[%c0, %c0_0] : memref<2x256xf32, #tpu.memory_space<vmem>>, vector<2x256xf32>
    %c0_1 = arith.constant 0 : index
    %c0_2 = arith.constant 0 : index
    %1 = vector.load %arg3[%c0_1, %c0_2] : memref<1x256xf32, #tpu.memory_space<vmem>>, vector<1x256xf32>
    %2 = vector.broadcast %1 : vector<1x256xf32> to vector<2x256xf32>
    %3 = arith.addf %0, %2 : vector<2x256xf32>
    %c0_3 = arith.constant 0 : index
    %c0_4 = arith.constant 0 : index
    %4 = vector.load %arg4[%c0_3, %c0_4] : memref<2x256xf32, #tpu.memory_space<vmem>>, vector<2x256xf32>
    tpu.vector_store %arg4[%c0_3, %c0_4], %3 {strides = array<i32>} : memref<2x256xf32, #tpu.memory_space<vmem>>, vector<2x256xf32>,
    return
  }
  func.func @transform_0(%arg0: i32, %arg1: i32) -> (i32, i32) {
    %c0_i32 = arith.constant 0 : i32
    return %arg1, %arg0 : i32, i32
  }
  func.func @transform_1(%arg0: i32, %arg1: i32) -> (i32, i32) {
    %c0_i32 = arith.constant 0 : i32
    %c0_i32_0 = arith.constant 0 : i32
    return %c0_i32, %arg0 : i32, i32
  }
  func.func @transform_2(%arg0: i32, %arg1: i32) -> (i32, i32) {
    %c0_i32 = arith.constant 0 : i32
    return %arg1, %arg0 : i32, i32
  }
}

</mosaic_0001>

<bundles_post_ra>
// kernel: tpu_custom_call.1
= control target key start
LH: loop header
LB: loop body
LE: loop exit
PB: predicated region body
PF: predicated region fallthrough
CT: control target
= control target key end

     0   :  { %7 = vsyncpa [#allocation3], 0  ;;  %s157_s0 = inlined_call_operand.hbm [shape: f32[2,256], index: 0, kind: input, shape index: {}]   ;;  %s158_s1 = inlined_call_operand.vmem [shape: f32[1,256], index: 1, kind: input, shape index: {}]   ;;  %s159_s2 = inlined_call_operand.hbm [shape: f32[2,256], index: 2, kind: output, shape index: {}]  }
   0x1   :  { %8 = vsyncpa [#allocation4], 0  ;;  %s112_s9 = smov [#allocation2]   ;;  %s64_s13 = scalar_lea.hbm %s157_s0, 64 }
   0x2   :  { %s15_s10 = sshll.u32 %s112_s9, 4  ;;  %p65_p0 = scmp.ne.s32.totalorder %s157_s0, %s64_s13  ;;  %s16_s10 = int_to_ptr.vmem [resolvable:$true] %s15_s10 }
   0x3   :  { %p68_p1 = scmp.lt.u32.totalorder %s64_s13, %s157_s0 }
   0x5   :  { %p70_p2 = pnand %p68_p1, %p65_p0 }
   0x7   :  { %73 = shalt.err (!%p70_p2)
}
   0x8   :  { %s74_s18 = scalar_lea.vmem %s16_s10, 64  ;;  %p79_p4 = scmp.lt.s32.totalorder %s16_s10, %s16_s10 }
   0x9   :  { %p75_p3 = scmp.ne.s32.totalorder %s16_s10, %s74_s18  ;;  %p80_p5 = scmp.lt.s32.totalorder %s74_s18, %s74_s18 }
   0xb   :  { %p81_p6 = por %p80_p5, %p79_p4 }
   0xd   :  { %p82_p7 = pnand %p81_p6, %p75_p3 }
   0xf   :  { %85 = shalt.err (!%p82_p7)
}
  0x10   :  { %18 = dma.hbm_to_vmem [thread:$0]  %s157_s0, 64, %s16_s10, [#allocation3]  }
  0x11   :  { %108 = dma.done.wait [#allocation3], 64  }
  0x12   :  { %109 = vsyncadd [#allocation3], 4294967232  ;;  %v27_v0 = vlaneseq  ;;  %v113_v1 = vmov 1983009808   ;;  %v25_v7 = vld [vmem:[%s158_s1] sm:$0x3] }
  0x13   :  { %v37_v2 = vunpack.c.l.s4 %v113_v1  ;;  %v24_v12 = vld [vmem:[#allocation2] sm:$0xf]  ;;  %s114_s23 = smov [#allocation5]  }
  0x14   :  { %v28_v3 = vshrl.u32 %v27_v0, 7  ;;  %s52_s0 = sshll.u32 %s114_s23, 4  ;;  %s53_s0 = int_to_ptr.vmem [resolvable:$true] %s52_s0 }
  0x15   :  { %v38_v6 = vunpack.c.0.s8 %v37_v2  ;;  %s86_s24 = scalar_lea.vmem %s53_s0, 64  ;;  %p91_p9 = scmp.lt.s32.totalorder %s53_s0, %s53_s0 }
  0x16   :  { %v29_v4 = vsub.s32 0, %v28_v3  ;;  %v33_v5 = vsub.s32 1, %v28_v3  ;;  %p87_p8 = scmp.ne.s32.totalorder %s53_s0, %s86_s24  ;;  %p92_p10 = scmp.lt.s32.totalorder %s86_s24, %s86_s24 }
  0x17   :  { %v41_v10 = vsub.s32 %v38_v6, %v28_v3 }
  0x18   :  { %v30_v8 = vrot.slane %v25_v7, %v29_v4  ;;  %v34_v9 = vrot.slane %v25_v7, %v33_v5  ;;  %p93_p11 = por %p92_p10, %p91_p9 }
  0x1a   :  { %v35_v11 = vcombine.low %v30_v8, %v34_v9  ;;  %p94_p12 = pnand %p93_p11, %p87_p8 }
  0x1c   :  { %v42_v13 = vrot.slane %v35_v11, %v41_v10 }
  0x1e   :  { %v44_v14 = vadd.f32 %v42_v13, %v24_v12 }
  0x20   :  { %45 = vst [vmem:[#allocation5] sm:$0xf] %v44_v14 }
  0x21   :  { %97 = shalt.err (!%p94_p12)
}
  0x22   :  { %s98_s26 = scalar_lea.hbm %s159_s2, 64 }
  0x23   :  { %p99_p13 = scmp.ne.s32.totalorder %s159_s2, %s98_s26  ;;  %p102_p0 = scmp.lt.u32.totalorder %s98_s26, %s159_s2 }
  0x25   :  { %p104_p1 = pnand %p102_p0, %p99_p13 }
  0x27   :  { %107 = shalt.err (!%p104_p1)
}
  0x28   :  { %55 = dma.vmem_to_hbm [thread:$0]  %s53_s0, 64, %s159_s2, [#allocation4]  }
  0x29   :  { %110 = dma.done.wait [#allocation4], 64  }
  0x2a   :  { %111 = vsyncadd [#allocation4], 4294967232 }
  0x2b   :  { %59 = vsyncpa [#allocation3], 1 }
  0x2c   :  { %60 = vsyncpa [#allocation4], 1 }

</bundles_post_ra>
